<compile_context>
chip_gen: v7x
topology: tpu7x:2x2x1
jax: 0.10.0
libtpu: 0.0.40
codegen_flags: <defaults>
</compile_context>

<pallas_src>
import jax
import jax.numpy as jnp
import numpy as np
from jax import lax
from jax.experimental import pallas as pl
from jax.experimental.pallas import tpu as pltpu

C_IN = 128
C_HID = 32
W_ROWS = C_HID + 3 + 4 + 3   # 42 fused first-layer output channels
OUT_ROWS = 3 + 9 + 3 + 1     # 16-row output slab


def _para_pred_kernel(x_ref, w_ref, b_ref, we2_ref, be2_ref, out_ref):
    # x_ref  : (128, TN)       activations (channels-major, lane-dense over points)
    # w_ref  : (42, 128)       fused weights, rows = [ext1(32) | scale(3) | rot(4) | trans(3)]
    # b_ref  : (42, 1)  f32    fused biases (same row order)
    # we2_ref: (32, 1)  f32    second existence projection weights
    # be2_ref: (1, 1)   f32    second existence projection bias
    # out_ref: (16, TN) f32    [scale(3) | rot(9) | trans(3) | exist(1)]
    x = x_ref[...]

    heads = jnp.dot(w_ref[...], x, preferred_element_type=jnp.float32)
    heads = heads + b_ref[...]                       # (42, TN) f32

    # --- existence head: LeakyReLU(0.2), then 32 -> 1 as multiply + sublane reduce ---
    h = heads[0:C_HID, :]
    h = jnp.where(h >= 0.0, h, 0.2 * h)
    exist = jnp.sum(h * we2_ref[...], axis=0, keepdims=True) + be2_ref[...]   # (1, TN)

    # --- scale head: sigmoid (EUP exp) ---
    scale = jax.nn.sigmoid(heads[32:35, :])          # (3, TN)

    # --- rotation head: L2-normalize quaternion (rsqrt on EUP), quat2mat ---
    q0 = heads[35:36, :]
    q1 = heads[36:37, :]
    q2 = heads[37:38, :]
    q3 = heads[38:39, :]
    sumsq = q0 * q0 + q1 * q1 + q2 * q2 + q3 * q3
    # == 1 / max(||q||, 1e-12) for any non-degenerate quaternion
    inv = lax.rsqrt(jnp.maximum(sumsq, 1e-24))
    w = q0 * inv
    xq = q1 * inv
    y = q2 * inv
    z = q3 * inv
    w2, x2, y2, z2 = w * w, xq * xq, y * y, z * z
    # doubled cross terms hoisted so each matrix entry is a single add/sub
    twx, twy, twz = 2.0 * (w * xq), 2.0 * (w * y), 2.0 * (w * z)
    txy, txz, tyz = 2.0 * (xq * y), 2.0 * (xq * z), 2.0 * (y * z)

    # --- translation head: tanh (EUP) ---
    trans = jnp.tanh(heads[39:42, :])                # (3, TN)

    # --- single lane-dense output slab, one full-tile store ---
    slab = jnp.concatenate(
        [
            scale,
            w2 + x2 - y2 - z2, txy - twz, twy + txz,
            twz + txy, w2 - x2 + y2 - z2, tyz - twx,
            txz - twy, twx + tyz, w2 - x2 - y2 + z2,
            trans,
            exist,
        ],
        axis=0,
    )                                                # (16, TN)
    out_ref[...] = slab


def para_pred_pallas(x_cuboid, params, *, tile_n=2048, compute_dtype=jnp.float32):
    """x_cuboid: (B, 128, N). Returns (scale, rotate, trans, exist)."""
    B, C, N = x_cuboid.shape
    assert C == C_IN

    (ws, bs), (wr, br), (wt, bt), (we1, be1), (we2, be2) = params

    # Fuse the four first-layer projections: rows [ext1(32) | scale(3) | rot(4) | trans(3)].
    w_all = jnp.concatenate([we1, ws, wr, wt], axis=0).astype(compute_dtype)      # (42, 128)
    b_all = jnp.concatenate([be1, bs, br, bt], axis=0).reshape(W_ROWS, 1)
    b_all = b_all.astype(jnp.float32)
    we2_col = we2.reshape(C_HID, 1).astype(jnp.float32)
    be2_sc = be2.reshape(1, 1).astype(jnp.float32)

    # Lane-dense point tile (multiple of 128); pad ragged N in the wrapper.
    tile_n = max(128, (int(tile_n) // 128) * 128)
    tile_n = min(tile_n, pl.cdiv(N, 128) * 128)      # never bigger than padded N
    n_pad = pl.cdiv(N, tile_n) * tile_n

    x_in = x_cuboid.astype(compute_dtype)
    if n_pad != N:
        x_in = jnp.pad(x_in, ((0, 0), (0, 0), (0, n_pad - N)))

    grid = (B, n_pad // tile_n)

    out = pl.pallas_call(
        _para_pred_kernel,
        out_shape=jax.ShapeDtypeStruct((B, OUT_ROWS, n_pad), jnp.float32),
        grid_spec=pltpu.PrefetchScalarGridSpec(
            num_scalar_prefetch=0,
            grid=grid,
            in_specs=[
                pl.BlockSpec((pl.Squeezed(), C_IN, tile_n), lambda b, n: (b, 0, n)),
                pl.BlockSpec((W_ROWS, C_IN), lambda b, n: (0, 0)),
                pl.BlockSpec((W_ROWS, 1), lambda b, n: (0, 0)),
                pl.BlockSpec((C_HID, 1), lambda b, n: (0, 0)),
                pl.BlockSpec((1, 1), lambda b, n: (0, 0)),
            ],
            out_specs=pl.BlockSpec((pl.Squeezed(), OUT_ROWS, tile_n),
                                   lambda b, n: (b, 0, n)),
        ),
        compiler_params=pltpu.CompilerParams(
            dimension_semantics=("parallel", "parallel"),
        ),
    )(x_in, w_all, b_all, we2_col, be2_sc)

    # Small (B, 16, N) -> (B, N, 16) transpose in the wrapper keeps the kernel's
    # store lane-dense (avoids 16-wide masked partial stores).
    out = jnp.transpose(out[:, :, :N], (0, 2, 1))    # (B, N, 16)
    scale = out[..., 0:3]
    rotate = out[..., 3:12].reshape(B, N, 3, 3)
    trans = out[..., 12:15]
    exist = out[..., 15:16]
    return scale, rotate, trans, exist


def make_params(key):
    """Deterministic synthetic parameters in PyTorch Conv1d layout (Co, Ci); biases (Co,)."""
    ks = jax.random.split(key, 7)

    def w(k, co, ci):
        bound = 1.0 / np.sqrt(ci)
        return jax.random.uniform(k, (co, ci), jnp.float32, -bound, bound)

    ws = w(ks[0], 3, C_IN)
    bs = jnp.zeros((3,), jnp.float32)                           # zero-init bias
    wr = w(ks[1], 4, C_IN)
    br = jnp.array([1.0, 0.0, 0.0, 0.0], jnp.float32)           # identity-quat bias
    wt = w(ks[2], 3, C_IN)
    bt = jnp.zeros((3,), jnp.float32)                           # zero-init bias
    we1 = w(ks[3], C_HID, C_IN)
    be1 = jax.random.uniform(ks[4], (C_HID,), jnp.float32,
                             -1.0 / np.sqrt(C_IN), 1.0 / np.sqrt(C_IN))
    we2 = w(ks[5], 1, C_HID)
    be2 = jax.random.uniform(ks[6], (1,), jnp.float32,
                             -1.0 / np.sqrt(C_HID), 1.0 / np.sqrt(C_HID))
    return (ws, bs), (wr, br), (wt, bt), (we1, be1), (we2, be2)


def para_pred_reference(x_cuboid, params):
    """Pure-JAX reference mirroring the PyTorch forward (for validation)."""
    (ws, bs), (wr, br), (wt, bt), (we1, be1), (we2, be2) = params
    x = jnp.transpose(x_cuboid, (0, 2, 1))                      # (B, N, 128)

    scale = jax.nn.sigmoid(x @ ws.T + bs)
    q = x @ wr.T + br
    q = q / jnp.maximum(jnp.linalg.norm(q, axis=-1, keepdims=True), 1e-12)
    w, xq, y, z = q[..., 0], q[..., 1], q[..., 2], q[..., 3]
    w2, x2, y2, z2 = w * w, xq * xq, y * y, z * z
    wx, wy, wz = w * xq, w * y, w * z
    xy, xz, yz = xq * y, xq * z, y * z
    rot = jnp.stack(
        [
            w2 + x2 - y2 - z2, 2 * xy - 2 * wz, 2 * wy + 2 * xz,
            2 * wz + 2 * xy, w2 - x2 + y2 - z2, 2 * yz - 2 * wx,
            2 * xz - 2 * wy, 2 * wx + 2 * yz, w2 - x2 - y2 + z2,
        ],
        axis=-1,
    ).reshape(x.shape[0], x.shape[1], 3, 3)
    trans = jnp.tanh(x @ wt.T + bt)
    h = x @ we1.T + be1
    h = jnp.where(h >= 0, h, 0.2 * h)
    exist = h @ we2.T + be2
    return scale, rot, trans, exist


if __name__ == "__main__":
    key = jax.random.PRNGKey(0)
    k_x, k_p, k_x2 = jax.random.split(key, 3)
    params = make_params(k_p)

    # Small shapes consistent with the module: 2 samples, 8 cuboid queries, 128 channels.
    B, N = 2, 8
    x_cuboid = jax.random.normal(k_x, (B, C_IN, N), jnp.float32)
    outs = jax.block_until_ready(para_pred_pallas(x_cuboid, params))
    refs = jax.block_until_ready(para_pred_reference(x_cuboid, params))
    for o, r in zip(outs, refs):
        np.testing.assert_allclose(np.asarray(o), np.asarray(r), rtol=1e-5, atol=1e-5)

    # Multi-tile grid + ragged tail (N=200 -> padded to 256 at tile_n=128).
    B2, N2 = 2, 200
    x2 = jax.random.normal(k_x2, (B2, C_IN, N2), jnp.float32)
    outs2 = jax.block_until_ready(para_pred_pallas(x2, params, tile_n=128))
    refs2 = jax.block_until_ready(para_pred_reference(x2, params))
    for o, r in zip(outs2, refs2):
        np.testing.assert_allclose(np.asarray(o), np.asarray(r), rtol=1e-5, atol=1e-5)

    # Default large tile on a bigger N (single clamp path) for coverage.
    outs3 = jax.block_until_ready(para_pred_pallas(x2, params))
    for o, r in zip(outs3, refs2):
        np.testing.assert_allclose(np.asarray(o), np.asarray(r), rtol=1e-5, atol=1e-5)

    # bf16-input path (memory-bound win on v6e/v7x); heads math stays f32, loose tolerance.
    outs_bf16 = jax.block_until_ready(
        para_pred_pallas(x2, params, tile_n=128, compute_dtype=jnp.bfloat16))
    for o, r in zip(outs_bf16, refs2):
        np.testing.assert_allclose(np.asarray(o), np.asarray(r), rtol=1e-1, atol=1e-1)

    print("KERNEL_OK")
</pallas_src>

<mosaic_0001>
module attributes {stable_mosaic.version = 11 : i64} {
  func.func @_para_pred_kernel(%arg0: i32, %arg1: i32, %arg2: memref<1x128x128xf32, #tpu.memory_space<vmem>>, %arg3: memref<42x128xf32, #tpu.memory_space<vmem>>, %arg4: memref<42x1xf32, #tpu.memory_space<vmem>>, %arg5: memref<32x1xf32, #tpu.memory_space<vmem>>, %arg6: memref<1x1xf32, #tpu.memory_space<vmem>>, %arg7: memref<1x16x128xf32, #tpu.memory_space<vmem>>) attributes {dimension_semantics = [#tpu.dimension_semantics<parallel>, #tpu.dimension_semantics<parallel>], iteration_bounds = array<i64: 2, 1>, scalar_prefetch = 0 : i64, scratch_operands = 0 : i64, tpu.core_type = #tpu.core_type<tc>, window_params = [{transform_indices = @transform_0, window_bounds = array<i64: 1, 128, 128>}, {pipeline_mode = #tpu.pipeline_mode<synchronous>, transform_indices = @transform_1, window_bounds = array<i64: 42, 128>}, {pipeline_mode = #tpu.pipeline_mode<synchronous>, transform_indices = @transform_2, window_bounds = array<i64: 42, 1>}, {pipeline_mode = #tpu.pipeline_mode<synchronous>, transform_indices = @transform_3, window_bounds = array<i64: 32, 1>}, {pipeline_mode = #tpu.pipeline_mode<synchronous>, transform_indices = @transform_4, window_bounds = array<i64: 1, 1>}, {transform_indices = @transform_5, window_bounds = array<i64: 1, 16, 128>}]} {
    %c0 = arith.constant 0 : index
    %c0_0 = arith.constant 0 : index
    %c0_1 = arith.constant 0 : index
    %0 = vector.load %arg2[%c0, %c0_0, %c0_1] : memref<1x128x128xf32, #tpu.memory_space<vmem>>, vector<1x128x128xf32>
    %1 = vector.shape_cast %0 : vector<1x128x128xf32> to vector<128x128xf32>
    %c0_2 = arith.constant 0 : index
    %c0_3 = arith.constant 0 : index
    %2 = vector.load %arg3[%c0_2, %c0_3] : memref<42x128xf32, #tpu.memory_space<vmem>>, vector<42x128xf32>
    %cst = arith.constant dense<0.000000e+00> : vector<42x128xf32>
    %3 = tpu.matmul %2, %1, %cst {dimension_numbers = #tpu.dot_dimension_numbers<[1], [0], [0], [1], [0, 0, 1, 1], [], []>} : vector<42x128xf32>, vector<128x128xf32>, vector<42x128xf32> -> vector<42x128xf32>
    %c0_4 = arith.constant 0 : index
    %c0_5 = arith.constant 0 : index
    %4 = vector.load %arg4[%c0_4, %c0_5] : memref<42x1xf32, #tpu.memory_space<vmem>>, vector<42x1xf32>
    %5 = vector.broadcast %4 : vector<42x1xf32> to vector<42x128xf32>
    %6 = arith.addf %3, %5 : vector<42x128xf32>
    %7 = vector.extract_strided_slice %6 {offsets = [0, 0], sizes = [32, 128], strides = [1, 1]} : vector<42x128xf32> to vector<32x128xf32>
    %cst_6 = arith.constant 0.000000e+00 : f32
    %8 = vector.broadcast %cst_6 : f32 to vector<32x128xf32>
    %9 = arith.cmpf oge, %7, %8 : vector<32x128xf32>
    %cst_7 = arith.constant 2.000000e-01 : f32
    %10 = vector.broadcast %cst_7 : f32 to vector<32x128xf32>
    %11 = arith.mulf %10, %7 : vector<32x128xf32>
    %12 = arith.select %9, %7, %11 : vector<32x128xi1>, vector<32x128xf32>
    %c0_8 = arith.constant 0 : index
    %c0_9 = arith.constant 0 : index
    %13 = vector.load %arg5[%c0_8, %c0_9] : memref<32x1xf32, #tpu.memory_space<vmem>>, vector<32x1xf32>
    %14 = vector.broadcast %13 : vector<32x1xf32> to vector<32x128xf32>
    %15 = arith.mulf %12, %14 : vector<32x128xf32>
    %cst_10 = arith.constant dense<0.000000e+00> : vector<128xf32>
    %16 = vector.multi_reduction <add>, %15, %cst_10 [0] : vector<32x128xf32> to vector<128xf32>
    %17 = vector.shape_cast %16 : vector<128xf32> to vector<1x128xf32>
    %c0_11 = arith.constant 0 : index
    %c0_12 = arith.constant 0 : index
    %18 = vector.load %arg6[%c0_11, %c0_12] : memref<1x1xf32, #tpu.memory_space<vmem>>, vector<1x1xf32>
    %19 = vector.broadcast %18 : vector<1x1xf32> to vector<1x128xf32>
    %20 = arith.addf %17, %19 : vector<1x128xf32>
    %21 = vector.extract_strided_slice %6 {offsets = [32, 0], sizes = [3, 128], strides = [1, 1]} : vector<42x128xf32> to vector<3x128xf32>
    %22 = arith.negf %21 : vector<3x128xf32>
    %23 = math.exp %22 : vector<3x128xf32>
    %cst_13 = arith.constant 1.000000e+00 : f32
    %24 = vector.broadcast %cst_13 : f32 to vector<3x128xf32>
    %25 = arith.addf %24, %23 : vector<3x128xf32>
    %26 = arith.divf %24, %25 : vector<3x128xf32>
    %27 = vector.extract_strided_slice %6 {offsets = [35, 0], sizes = [1, 128], strides = [1, 1]} : vector<42x128xf32> to vector<1x128xf32>
    %28 = vector.extract_strided_slice %6 {offsets = [36, 0], sizes = [1, 128], strides = [1, 1]} : vector<42x128xf32> to vector<1x128xf32>
    %29 = vector.extract_strided_slice %6 {offsets = [37, 0], sizes = [1, 128], strides = [1, 1]} : vector<42x128xf32> to vector<1x128xf32>
    %30 = vector.extract_strided_slice %6 {offsets = [38, 0], sizes = [1, 128], strides = [1, 1]} : vector<42x128xf32> to vector<1x128xf32>
    %31 = arith.mulf %27, %27 : vector<1x128xf32>
    %32 = arith.mulf %28, %28 : vector<1x128xf32>
    %33 = arith.addf %31, %32 : vector<1x128xf32>
    %34 = arith.mulf %29, %29 : vector<1x128xf32>
    %35 = arith.addf %33, %34 : vector<1x128xf32>
    %36 = arith.mulf %30, %30 : vector<1x128xf32>
    %37 = arith.addf %35, %36 : vector<1x128xf32>
    %cst_14 = arith.constant 1.000000e-24 : f32
    %38 = vector.broadcast %cst_14 : f32 to vector<1x128xf32>
    %39 = arith.maximumf %37, %38 : vector<1x128xf32>
    %40 = math.rsqrt %39 : vector<1x128xf32>
    %41 = arith.mulf %27, %40 : vector<1x128xf32>
    %42 = arith.mulf %28, %40 : vector<1x128xf32>
    %43 = arith.mulf %29, %40 : vector<1x128xf32>
    %44 = arith.mulf %30, %40 : vector<1x128xf32>
    %45 = arith.mulf %41, %41 : vector<1x128xf32>
    %46 = arith.mulf %42, %42 : vector<1x128xf32>
    %47 = arith.mulf %43, %43 : vector<1x128xf32>
    %48 = arith.mulf %44, %44 : vector<1x128xf32>
    %49 = arith.mulf %41, %42 : vector<1x128xf32>
    %cst_15 = arith.constant 2.000000e+00 : f32
    %50 = vector.broadcast %cst_15 : f32 to vector<1x128xf32>
    %51 = arith.mulf %50, %49 : vector<1x128xf32>
    %52 = arith.mulf %41, %43 : vector<1x128xf32>
    %cst_16 = arith.constant 2.000000e+00 : f32
    %53 = vector.broadcast %cst_16 : f32 to vector<1x128xf32>
    %54 = arith.mulf %53, %52 : vector<1x128xf32>
    %55 = arith.mulf %41, %44 : vector<1x128xf32>
    %cst_17 = arith.constant 2.000000e+00 : f32
    %56 = vector.broadcast %cst_17 : f32 to vector<1x128xf32>
    %57 = arith.mulf %56, %55 : vector<1x128xf32>
    %58 = arith.mulf %42, %43 : vector<1x128xf32>
    %cst_18 = arith.constant 2.000000e+00 : f32
    %59 = vector.broadcast %cst_18 : f32 to vector<1x128xf32>
    %60 = arith.mulf %59, %58 : vector<1x128xf32>
    %61 = arith.mulf %42, %44 : vector<1x128xf32>
    %cst_19 = arith.constant 2.000000e+00 : f32
    %62 = vector.broadcast %cst_19 : f32 to vector<1x128xf32>
    %63 = arith.mulf %62, %61 : vector<1x128xf32>
    %64 = arith.mulf %43, %44 : vector<1x128xf32>
    %cst_20 = arith.constant 2.000000e+00 : f32
    %65 = vector.broadcast %cst_20 : f32 to vector<1x128xf32>
    %66 = arith.mulf %65, %64 : vector<1x128xf32>
    %67 = vector.extract_strided_slice %6 {offsets = [39, 0], sizes = [3, 128], strides = [1, 1]} : vector<42x128xf32> to vector<3x128xf32>
    %68 = math.tanh %67 : vector<3x128xf32>
    %69 = arith.addf %45, %46 : vector<1x128xf32>
    %70 = arith.subf %69, %47 : vector<1x128xf32>
    %71 = arith.subf %70, %48 : vector<1x128xf32>
    %72 = arith.subf %60, %57 : vector<1x128xf32>
    %73 = arith.addf %54, %63 : vector<1x128xf32>
    %74 = arith.addf %57, %60 : vector<1x128xf32>
    %75 = arith.subf %45, %46 : vector<1x128xf32>
    %76 = arith.addf %75, %47 : vector<1x128xf32>
    %77 = arith.subf %76, %48 : vector<1x128xf32>
    %78 = arith.subf %66, %51 : vector<1x128xf32>
    %79 = arith.subf %63, %54 : vector<1x128xf32>
    %80 = arith.addf %51, %66 : vector<1x128xf32>
    %81 = arith.subf %45, %46 : vector<1x128xf32>
    %82 = arith.subf %81, %47 : vector<1x128xf32>
    %83 = arith.addf %82, %48 : vector<1x128xf32>
    %84 = tpu.concatenate %26, %71, %72, %73, %74, %77, %78, %79, %80, %83, %68, %20 in 0 : vector<3x128xf32>, vector<1x128xf32>, vector<1x128xf32>, vector<1x128xf32>, vector<1x128xf32>, vector<1x128xf32>, vector<1x128xf32>, vector<1x128xf32>, vector<1x128xf32>, vector<1x128xf32>, vector<3x128xf32>, vector<1x128xf32> -> vector<16x128xf32>
    %c0_21 = arith.constant 0 : index
    %c0_22 = arith.constant 0 : index
    %c0_23 = arith.constant 0 : index
    %85 = vector.load %arg7[%c0_21, %c0_22, %c0_23] : memref<1x16x128xf32, #tpu.memory_space<vmem>>, vector<1x16x128xf32>
    %86 = vector.shape_cast %85 : vector<1x16x128xf32> to vector<16x128xf32>
    %87 = vector.shape_cast %84 : vector<16x128xf32> to vector<1x16x128xf32>
    tpu.vector_store %arg7[%c0_21, %c0_22, %c0_23], %87 {strides = array<i32>} : memref<1x16x128xf32, #tpu.memory_space<vmem>>, vector<1x16x128xf32>,
    return
  }
  func.func @transform_0(%arg0: i32, %arg1: i32) -> (i32, i32, i32) {
    %c0_i32 = arith.constant 0 : i32
    %c0_i32_0 = arith.constant 0 : i32
    return %arg0, %c0_i32, %arg1 : i32, i32, i32
  }
  func.func @transform_1(%arg0: i32, %arg1: i32) -> (i32, i32) {
    %c0_i32 = arith.constant 0 : i32
    %c0_i32_0 = arith.constant 0 : i32
    %c0_i32_1 = arith.constant 0 : i32
    return %c0_i32, %c0_i32_0 : i32, i32
  }
  func.func @transform_2(%arg0: i32, %arg1: i32) -> (i32, i32) {
    %c0_i32 = arith.constant 0 : i32
    %c0_i32_0 = arith.constant 0 : i32
    %c0_i32_1 = arith.constant 0 : i32
    return %c0_i32, %c0_i32_0 : i32, i32
  }
  func.func @transform_3(%arg0: i32, %arg1: i32) -> (i32, i32) {
    %c0_i32 = arith.constant 0 : i32
    %c0_i32_0 = arith.constant 0 : i32
    %c0_i32_1 = arith.constant 0 : i32
    return %c0_i32, %c0_i32_0 : i32, i32
  }
  func.func @transform_4(%arg0: i32, %arg1: i32) -> (i32, i32) {
    %c0_i32 = arith.constant 0 : i32
    %c0_i32_0 = arith.constant 0 : i32
    %c0_i32_1 = arith.constant 0 : i32
    return %c0_i32, %c0_i32_0 : i32, i32
  }
  func.func @transform_5(%arg0: i32, %arg1: i32) -> (i32, i32, i32) {
    %c0_i32 = arith.constant 0 : i32
    %c0_i32_0 = arith.constant 0 : i32
    return %arg0, %c0_i32, %arg1 : i32, i32, i32
  }
}

</mosaic_0001>

<bundles_post_ra>
// kernel: tpu_custom_call.1
= control target key start
LH: loop header
LB: loop body
LE: loop exit
PB: predicated region body
PF: predicated region fallthrough
CT: control target
= control target key end

     0   :  { %s1348_s0 = inlined_call_operand.hbm [shape: f32[2,128,128], index: 0, kind: input, shape index: {}]   ;;  %s1349_s1 = inlined_call_operand.vmem [shape: f32[42,128], index: 1, kind: input, shape index: {}]   ;;  %s1350_s2 = inlined_call_operand.vmem [shape: f32[42,1], index: 2, kind: input, shape index: {}]   ;;  %s1351_s3 = inlined_call_operand.vmem [shape: f32[32,1], index: 3, kind: input, shape index: {}]   ;;  %s1352_s4 = inlined_call_operand.<no memory space> [shape: f32[1,1], index: 4, kind: input, shape index: {}]   ;;  %s1353_s5 = inlined_call_operand.hbm [shape: f32[2,16,128], index: 5, kind: output, shape index: {}]  }
   0x1   :  { %v10_v0 = vstv %s1352_s4 }
   0x2   :  { %11 = vst [vmem:[#allocation2] sm:$0x1] %v10_v0 }
   0x3   :  { %12 = vsyncpa [#allocation4], 0 }
   0x4   :  { %14 = vsyncpa [#allocation4 + $0x1], 0 }
   0x5   :  { %15 = vsyncpa [#allocation5], 0 }
   0x6   :  { %17 = vsyncpa [#allocation5 + $0x1], 0  ;;  %s1084_s20 = smov 0   ;;  %s1086_s21 = smov 0  }
   0x7   :  { %s1088_s22 = smov 0   ;;  %s1090_s23 = smov 0  }
   0x8   :  { %s1092_s24 = smov 0   ;;  %s1094_s25 = smov 0  }
   0x9 LB: > { %s722_s4 = sadd.s32 4294967295, %s1042_s25   ;;  %s723_s26 = sadd.s32 4294967294, %s1042_s25   ;;  %s1042_s25 = sphi %s1094_s25, %s23_s25   ;;  %s1038_s24 = sphi %s1092_s24, %s1368_s24   ;;  %s1034_s23 = sphi %s1090_s23, %s1367_s23   ;;  %s1030_s22 = sphi %s1088_s22, %s1366_s22   ;;  %s1026_s21 = sphi %s1086_s21, %s1365_s21   ;;  %s1022_s20 = sphi %s1084_s20, %s1364_s20  }
   0xa   : > { %s35_s27 = sadd.s32 1, %s1038_s24  ;;  %s44_s28 = sadd.s32 1, %s1030_s22 }
   0xb   : > { %p37_p0 = scmp.ge.s32.totalorder %s35_s27, 2  ;;  %p51_p1 = scmp.ne.s32.totalorder %s1030_s22, %s1026_s21 }
   0xc   : > { %p52_p2 = scmp.eq.s32.totalorder %s1042_s25, 0  ;;  %p57_p3 = scmp.ne.s32.totalorder %s1026_s21, %s1022_s20 }
   0xd   : > { %s1370_s27 = smov (%p37_p0, %s35_s27), 0  ;;  %p58_p5 = scmp.eq.s32.totalorder %s722_s4, 0 }
   0xe   : > { %p1125_p4 = por %p52_p2, %p51_p1  ;;  %s39_s30 = ssub.s32 %s1038_s24, %s1370_s27 }
   0xf   : > { %p167_p6 = scmp.eq.s32.totalorder %s722_s4, 1  ;;  %p42_p7 = scmp.eq.s32.totalorder %s39_s30, 0 }
  0x10   : > { %p1131_p8 = por %p58_p5, %p57_p3  ;;  %p173_p10 = scmp.eq.s32.totalorder %s723_s26, 1 }
  0x11   : > { %p1135_p9 = por %p167_p6, %p51_p1  ;;  %p863_p13 = scmp.lt.s32.totalorder %s1042_s25, 2 }
  0x12   : > { %s1140_s8 = scalar_select %p42_p7, %s1030_s22, %s44_s28  }
  0x13   : > { %s1357_s7 = scalar_select %p1135_p9, 1, 0 }
  0x14   : > { %p1142_p11 = por %p173_p10, %p57_p3  ;;  %s205_s10 = sand.u32 1, %s1030_s22  }
  0x15   : > { %s726_s11 = sshll.u32 %s205_s10, 7  ;;  %s738_s12 = sshll.u32 %s1038_s24, 11 }
  0x16   : > { %s1358_s9 = scalar_select %p1142_p11, 1, 0 }
  0x17   : > { %s1153_s15 = scalar_lea.hbm %s1348_s0, %s738_s12  ;;  %s209_s16 = scalar_lea.vmem [#allocation3], %s726_s11 }
  0x18   : > { %s217_s17 = sshll.u32 %s209_s16, 4  ;;  %p1159_p0 = pnand %p863_p13, %p1125_p4  ;;  %s1155_s17 = int_to_ptr.vmem [resolvable:$true] %s217_s17 }
  0x19   : > { %s1164_s19 = scalar_lea.sflag [#allocation4], %s205_s10  ;;  %s930_s4 = scalar_lea.hbm %s1153_s15, 2048 }
  0x1a   : > { %p931_p2 = scmp.ne.s32.totalorder %s1153_s15, %s930_s4  ;;  %p932_p3 = pneg %p1159_p0 }
  0x1b   : > { %s935_s29 = scalar_lea.hbm %s1348_s0, 4096  ;;  %p936_p4 = scmp.lt.u32.totalorder %s1153_s15, %s1348_s0 }
  0x1c   : > { %p933_p5 = pnand %p932_p3, %p931_p2  ;;  %p937_p7 = scmp.lt.u32.totalorder %s935_s29, %s930_s4 }
  0x1d   : > { %p939_p13 = scmp.lt.u32.totalorder %s930_s4, %s1153_s15 }
  0x1e   : > { %p934_p6 = pneg %p933_p5  ;;  %p938_p10 = por %p937_p7, %p936_p4 }
  0x20   : > { %p940_p12 = por %p939_p13, %p938_p10 }
  0x22   : > { %p941_p1 = pnand %p940_p12, %p934_p6 }
  0x24   : > { %944 = shalt.err (!%p941_p1)
}
  0x25   : > { %s945_s10 = scalar_lea.vmem %s1155_s17, 2048  ;;  %s1044_s12 = smov [#allocation3]  }
  0x26   : > { %p946_p2 = scmp.ne.s32.totalorder %s1155_s17, %s945_s10  ;;  %s950_s13 = sshll.u32 %s1044_s12, 4  ;;  %s951_s13 = int_to_ptr.vmem [resolvable:$false] %s950_s13 }
  0x27   : > { %s952_s14 = scalar_lea.vmem %s951_s13, 4096  ;;  %p953_p9 = scmp.lt.s32.totalorder %s1155_s17, %s951_s13 }
  0x28   : > { %p948_p5 = pnand %p946_p2, %p932_p3  ;;  %p954_p4 = scmp.lt.s32.totalorder %s952_s14, %s945_s10 }
  0x2a   : > { %p949_p11 = pneg %p948_p5  ;;  %p955_p7 = por %p954_p4, %p953_p9 }
  0x2c   : > { %p956_p10 = pnand %p955_p7, %p949_p11 }
  0x2e   : > { %959 = shalt.err (!%p956_p10)
}
  0x2f   : > { %s1045_s16 = smov 128   ;;  %s1046_s4 = smov 8  }
  0x30   : > { %858 = dma.hbm_to_vmem [thread:$0]  (!%p1159_p0), %s1153_s15, 2048, %s1155_s17, %s1164_s19, %s1045_s16, %s1045_s16, %s1046_s4  }
  0x31   : > { %p225_p12 = scmp.lt.s32.totalorder %s1042_s25, 3  ;;  %p1360_p1 = scmp.ge.s32.totalorder %s1042_s25, 1 }
  0x33   : > { %p226_p3 = pnand %p1360_p1, %p225_p12 }
  0x34   : > { %s1196_s26 = sand.u32 (!%p226_p3), 1, %s1026_s21  }
  0x35   : > { %229 = sbr.rel (%p226_p3) target bundleno = 376 (0x178), region = 40  ;;  %s730_s28 = sshll.u32 (!%p226_p3), %s1196_s26, 7 }
  0x36   : > { %s232_s29 = scalar_lea.sflag (!%p226_p3), [#allocation4], %s1196_s26  ;;  %s1200_s30 = scalar_lea.vmem (!%p226_p3), [#allocation3], %s730_s28 }
  0x3c   : > { %1013 = dma.done.wait (%p1131_p8), %s232_s29, 2048  }
  0x3d   : > { %1015 = vsyncadd (%p1131_p8), %s232_s29, 4294965248  ;;  %v1047_v1 = vmov 0   ;;  %v262_v2 = vld [vmem:[%s1200_s30] sm:$0xff]  ;;  %v263_v3 = vld [vmem:[%s1200_s30 + $0x8] sm:$0xff]  ;;  %vm599_vm4 = vcmask 1044480   ;;  %vm604_vm5 = vcmask 1042432  }
  0x3e   : > { %918 = vset.pattern.permute.xlu0 %v1047_v1  ;;  %919 = vset.pattern.permute.xlu1 %v1047_v1  ;;  %v264_v4 = vld [vmem:[%s1200_s30 + $0x10] sm:$0xff]  ;;  %v803_v5 = vpack.c.bf16 %v263_v3, %v262_v2  ;;  %v265_v6 = vld [vmem:[%s1200_s30 + $0x18] sm:$0xff]  ;;  %v266_v8 = vld [vmem:[%s1200_s30 + $0x20] sm:$0xff]  ;;  %vm606_vm6 = vcmask 1043456   ;;  %vm613_vm7 = vcmask 1040384   ;;  %vm609_vm8 = vcmask 1045504  }
  0x3f   : > { %v807_v7 = vpack.c.bf16 %v265_v6, %v264_v4  ;;  %v267_v9 = vld [vmem:[%s1200_s30 + $0x28] sm:$0xff]  ;;  %v278_v11 = vld [vmem:[%s1349_s1] sm:$0xff]  ;;  %v268_v13 = vld [vmem:[%s1200_s30 + $0x30] sm:$0xff]  ;;  %vm615_vm9 = vcmask 1041408   ;;  %s731_s18 = sshll.u32 %s1196_s26, 4  ;;  %vm611_vm10 = vcmask 1046528  }
  0x40   : > { %804 = vmatprep.subr.bf16.mxu0 %v803_v5  ;;  %835 = vmatprep.subr.bf16.mxu1 %v803_v5  ;;  %v811_v10 = vpack.c.bf16 %v267_v9, %v266_v8  ;;  %v280_v12 = vld [vmem:[%s1349_s1 + $0x10] sm:$0xff]  ;;  %v269_v14 = vld [vmem:[%s1200_s30 + $0x38] sm:$0xff]  ;;  %v285_v16 = vld [vmem:[%s1350_s2 + $0x8] sm:$0xff]  ;;  %s739_s19 = sshll.u32 %s1034_s23, 8  ;;  %s261_s11 = scalar_lea.vmem [#allocation6], %s731_s18 }
  0x41   : > { %806 = vmatpush3.bf16.msra.mxu0 %v803_v5  ;;  %843 = vmatpush3.bf16.msra.mxu1 %v803_v5  ;;  %v288_v15 = vld [vmem:[%s1350_s2 + $0x20] sm:$0xff]  ;;  %v815_v17 = vpack.c.bf16 %v269_v14, %v268_v13  ;;  %v271_v19 = vld [vmem:[%s1200_s30 + $0x48] sm:$0xff]  ;;  %v272_v23 = vld [vmem:[%s1200_s30 + $0x50] sm:$0xff]  ;;  %s637_s10 = sshll.u32 %s261_s11, 4  ;;  %s1294_s13 = scalar_lea.hbm %s1353_s5, %s739_s19  ;;  %s1296_s10 = int_to_ptr.vmem [resolvable:$true] %s637_s10 }
  0x42   : > { %808 = vmatprep.subr.bf16.mxu0 %v807_v7  ;;  %836 = vmatprep.subr.bf16.mxu1 %v807_v7  ;;  %v270_v18 = vld [vmem:[%s1200_s30 + $0x40] sm:$0xff]  ;;  %v286_v21 = vld [vmem:[%s1350_s2 + $0x10] sm:$0xff]  ;;  %v273_v24 = vld [vmem:[%s1200_s30 + $0x58] sm:$0xff]  ;;  %s623_s14 = scalar_lea.sflag [#allocation5], %s1196_s26  ;;  %p1361_p9 = scmp.ne.s32.totalorder %s1357_s7, 0 }
  0x43   : > { %794 = vmatprep.mubr.f32.mxu0 %v278_v11  ;;  %797 = vmatprep.mubr.f32.mxu1 %v280_v12  ;;  %v284_v20 = vld [vmem:[%s1350_s2] sm:$0xff]  ;;  %v819_v22 = vpack.c.bf16 %v271_v19, %v270_v18  ;;  %v287_v25 = vld [vmem:[%s1350_s2 + $0x18] sm:$0xff]  ;;  %v823_v27 = vpack.c.bf16 %v273_v24, %v272_v23  ;;  %v275_v29 = vld [vmem:[%s1200_s30 + $0x68] sm:$0xff]  ;;  %s1048_s16 = smov [#allocation6]  }
  0x44   : > { %312 = vperm.xlu0 %918, %v288_v15   ;;  %297 = vperm.xlu1 %919, %v285_v16   ;;  %v427_v26 = vld [vmem:[%s1351_s3] sm:$0xff]  ;;  %v428_v30 = vld [vmem:[%s1351_s3 + $0x8] sm:$0xff]  ;;  %v429_v31 = vld [vmem:[%s1351_s3 + $0x10] sm:$0xff]  ;;  %s964_s4 = sshll.u32 %s1048_s16, 4  ;;  %s965_s4 = int_to_ptr.vmem [resolvable:$false] %s964_s4 }
  0x45   : > { %810 = vmatpush3.bf16.msra.mxu0 %v807_v7  ;;  %844 = vmatpush3.bf16.msra.mxu1 %v807_v7  ;;  %v274_v28 = vld [vmem:[%s1200_s30 + $0x60] sm:$0xff]  ;;  %v276_v33 = vld [vmem:[%s1200_s30 + $0x70] sm:$0xff]  ;;  %v277_v34 = vld [vmem:[%s1200_s30 + $0x78] sm:$0xff]  ;;  %s960_s30 = scalar_lea.vmem %s1296_s10, 256  ;;  %s966_s28 = scalar_lea.vmem %s965_s4, 512 }
  0x46   : > { %812 = vmatprep.subr.bf16.mxu0 %v811_v10  ;;  %837 = vmatprep.subr.bf16.mxu1 %v811_v10  ;;  %v827_v32 = vpack.c.bf16 %v275_v29, %v274_v28  ;;  %v430_v35 = vld [vmem:[%s1351_s3 + $0x18] sm:$0xff]  ;;  %v289_v36 = vld [vmem:[%s1350_s2 + $0x28] sm:$0x3]  ;;  %v831_v37 = vpack.c.bf16 %v277_v34, %v276_v33  ;;  %v464_v38 = vld [vmem:[#allocation2] sm:$0x1]  ;;  %v470_v33 = vlaneseq  ;;  %p961_p8 = scmp.ne.s32.totalorder %s1296_s10, %s960_s30  ;;  %p967_p6 = scmp.lt.s32.totalorder %s1296_s10, %s965_s4 }
  0x47   : > { %v279_v39 = vld [vmem:[%s1349_s1 + $0x8] sm:$0xff]  ;;  %v281_v40 = vld [vmem:[%s1349_s1 + $0x18] sm:$0xff]  ;;  %v282_v41 = vld [vmem:[%s1349_s1 + $0x20] sm:$0xff]  ;;  %p968_p13 = scmp.lt.s32.totalorder %s966_s28, %s960_s30 }
  0x48   : > { %292 = vperm.xlu0 %918, %v284_v20   ;;  %302 = vperm.xlu1 %919, %v286_v21   ;;  %v283_v42 = vld [vmem:[%s1349_s1 + $0x28] sm:$0x3]  ;;  %p962_p11 = pnand %p961_p8, %p1361_p9 }
  0x49   : > { %814 = vmatpush3.bf16.msra.mxu0 %v811_v10  ;;  %845 = vmatpush3.bf16.msra.mxu1 %v811_v10  ;;  %p969_p2 = por %p968_p13, %p967_p6 }
  0x4a   : > { %816 = vmatprep.subr.bf16.mxu0 %v815_v17  ;;  %838 = vmatprep.subr.bf16.mxu1 %v815_v17  ;;  %p963_p0 = pneg %p962_p11 }
  0x4c   : > { %307 = vperm.xlu0 %918, %v287_v25   ;;  %433 = vperm.xlu1 %919, %v427_v26   ;;  %p970_p5 = pnand %p969_p2, %p963_p0 }
  0x4d   : > { %818 = vmatpush3.bf16.msra.mxu0 %v815_v17  ;;  %846 = vmatpush3.bf16.msra.mxu1 %v815_v17 }
  0x4e   : > { %820 = vmatprep.subr.bf16.mxu0 %v819_v22  ;;  %839 = vmatprep.subr.bf16.mxu1 %v819_v22 }
  0x50   : > { %438 = vperm.xlu0 %918, %v428_v30   ;;  %443 = vperm.xlu1 %919, %v429_v31  }
  0x51   : > { %822 = vmatpush3.bf16.msra.mxu0 %v819_v22  ;;  %847 = vmatpush3.bf16.msra.mxu1 %v819_v22 }
  0x52   : > { %824 = vmatprep.subr.bf16.mxu0 %v823_v27  ;;  %840 = vmatprep.subr.bf16.mxu1 %v823_v27 }
  0x54   : > { %448 = vperm.xlu0 %918, %v430_v35   ;;  %317 = vperm.xlu1 %919, %v289_v36  }
  0x55   : > { %826 = vmatpush3.bf16.msra.mxu0 %v823_v27  ;;  %848 = vmatpush3.bf16.msra.mxu1 %v823_v27 }
  0x56   : > { %828 = vmatprep.subr.bf16.mxu0 %v827_v32  ;;  %841 = vmatprep.subr.bf16.mxu1 %v827_v32 }
  0x58   : > { %467 = vperm.xlu0 %918, %v464_v38  }
  0x59   : > { %830 = vmatpush3.bf16.msra.mxu0 %v827_v32  ;;  %849 = vmatpush3.bf16.msra.mxu1 %v827_v32 }
  0x5a   : > { %832 = vmatprep.subr.bf16.mxu0 %v831_v37  ;;  %842 = vmatprep.subr.bf16.mxu1 %v831_v37 }
  0x5d   : > { %834 = vmatpush3.bf16.msra.mxu0 %v831_v37  ;;  %850 = vmatpush3.bf16.msra.mxu1 %v831_v37  ;;  %v1273_v37 = vshrl.u32 %v470_v33, 7 }
  0x60   : > { %795 = vmatmul.mubr.f32.vlgmr.msra.gmra.mrb[0].mxu0 %v279_v39  ;;  %798 = vmatmul.mubr.f32.vlgmr.msra.gmra.mrb[0].mxu1 %v281_v40 }
  0x61   : > { %800 = vmatprep.mubr.f32.mxu1 %v282_v41 }
  0x64   : > { %801 = vmatmul.mubr.f32.gmra.mrb[2].mxu1 %v283_v42 }
  0xc3   : > { %v298_v43 = vpop.permute.xlu1 %297  ;;  %v313_v44 = vpop.permute.xlu0 %312 }
  0xc7   : > { %v303_v45 = vpop.permute.xlu1 %302  ;;  %v293_v46 = vpop.permute.xlu0 %292 }
  0xcb   : > { %v434_v47 = vpop.permute.xlu1 %433  ;;  %v308_v48 = vpop.permute.xlu0 %307 }
  0xcf   : > { %v444_v49 = vpop.permute.xlu1 %443  ;;  %v439_v60 = vpop.permute.xlu0 %438 }
  0xd3   : > { %v318_v63 = vpop.permute.xlu1 %317  ;;  %v449_v13 = vpop.permute.xlu0 %448 }
 0x133   : > { %v796_v50 = vpop.f32.mrb[0].mxu0  ;;  %v799_v51 = vpop.f32.mrb[0].mxu1 }
 0x134   : > { %v392_v52 = vadd.f32 %v796_v50, %v298_v43  ;;  %v402_v53 = vadd.f32 %v799_v51, %v308_v48  ;;  %v386_v54 = vpop.f32.mrb[1].mxu0  ;;  %v396_v55 = vpop.f32.mrb[1].mxu1 }
 0x135   : > { %v387_v56 = vadd.f32 %v386_v54, %v293_v46  ;;  %v397_v57 = vadd.f32 %v396_v55, %v303_v45 }
 0x136   : > { %vm416_vm0 = vcmp.ge.f32.partialorder %v392_v52, 0.0  ;;  %v420_v58 = vmul.f32 0.2, %v392_v52  ;;  %v422_v59 = vmul.f32 0.2, %v402_v53  ;;  %vm418_vm3 = vcmp.ge.f32.partialorder %v402_v53, 0.0 }
 0x137   : > { %vm415_vm1 = vcmp.ge.f32.partialorder %v387_v56, 0.0  ;;  %v419_v61 = vmul.f32 0.2, %v387_v56  ;;  %vm417_vm2 = vcmp.ge.f32.partialorder %v397_v57, 0.0  ;;  %v421_v62 = vmul.f32 0.2, %v397_v57 }
 0x138   : > { %v424_v0 = vsel %vm416_vm0, %v392_v52, %v420_v58  ;;  %v802_v1 = vpop.f32.mrb[2].mxu1  ;;  %v426_v9 = vsel %vm418_vm3, %v402_v53, %v422_v59 }
 0x139   : > { %v452_v2 = vmul.f32 %v439_v60, %v424_v0  ;;  %v423_v3 = vsel %vm415_vm1, %v387_v56, %v419_v61  ;;  %v425_v4 = vsel %vm417_vm2, %v397_v57, %v421_v62  ;;  %v406_v5 = vpop.f32.mrb[3].mxu1  ;;  %v412_v7 = vadd.f32 %v802_v1, %v318_v63 }
 0x13a   : > { %v451_v6 = vmul.f32 %v434_v47, %v423_v3  ;;  %v407_v8 = vadd.f32 %v406_v5, %v313_v44  ;;  %v453_v11 = vmul.f32 %v444_v49, %v425_v4  ;;  %v454_v14 = vmul.f32 %v449_v13, %v426_v9 }
 0x13b   : > { %920 = vtanh.f32 %v412_v7  ;;  %v472_v47 = vsub.s32 0, %v1273_v37 }
 0x13c   : > { %v455_v10 = vadd.f32 %v452_v2, %v451_v6  ;;  %v481_v12 = vmul.f32 %v407_v8, %v407_v8  ;;  %922 = vtanh.f32 %v407_v8  ;;  %v732_v20 = vmul.f32 -1.442695, %v407_v8 }
 0x13e   : > { %v456_v15 = vadd.f32 %v455_v10, %v453_v11  ;;  %v483_v16 = vrot.slane %v481_v12, 1  ;;  %v486_v19 = vrot.slane %v481_v12, 2  ;;  %v489_v23 = vrot.slane %v481_v12, 3 }
 0x13f   : > { %924 = vpow2.f32 %v732_v20 }
 0x140   : > { %v457_v17 = vadd.f32 %v456_v15, %v454_v14  ;;  %v485_v18 = vadd.f32 %v483_v16, %v481_v12 }
 0x142   : > { %v458_v21 = vrot.slane %v457_v17, 4  ;;  %v488_v22 = vadd.f32 %v486_v19, %v485_v18 }
 0x144   : > { %v491_v24 = vadd.f32 %v489_v23, %v488_v22  ;;  %v459_v26 = vadd.f32 %v458_v21, %v457_v17  ;;  %v468_v23 = vpop.permute.xlu0 %467 }
 0x145   : > { %v921_v25 = vpop.eup %920  ;;  %v473_v37 = vrot.slane %v468_v23, %v472_v47 }
 0x146   : > { %v492_v27 = vmax.f32 %v491_v24, 1e-24  ;;  %v923_v28 = vpop.eup %922  ;;  %v601_v29 = vrot.slane %v921_v25, 3  ;;  %v460_v31 = vrot.slane %v459_v26, 2 }
 0x147   : > { %v600_v30 = vrot.slane %v923_v28, 3 }
 0x148   : > { %926 = vrsqrt.f32 %v492_v27  ;;  %v461_v34 = vadd.f32 %v460_v31, %v459_v26 }
 0x149   : > { %v1271_v32 = vsel %vm599_vm4, %v600_v30, %v601_v29  ;;  %v925_v35 = vpop.eup %924 }
 0x14a   : > { %v462_v38 = vrot.slane %v461_v34, 1  ;;  %v478_v39 = vadd.f32 1.0, %v925_v35 }
 0x14c   : > { %v1276_v48 = vadd.f32 %v462_v38, %v461_v34  ;;  %928 = vrcp.f32 %v478_v39 }
 0x152   : > { %v927_v36 = vpop.eup %926 }
 0x153   : > { %v494_v40 = vmul.f32 %v927_v36, %v407_v8  ;;  %v496_v41 = vrot.slane %v927_v36, 7  ;;  %v499_v42 = vrot.slane %v927_v36, 6  ;;  %v502_v43 = vrot.slane %v927_v36, 5 }
 0x155   : > { %v498_v44 = vmul.f32 %v496_v41, %v407_v8  ;;  %v501_v45 = vmul.f32 %v499_v42, %v407_v8  ;;  %v504_v46 = vmul.f32 %v502_v43, %v407_v8  ;;  %v505_v49 = vmul.f32 %v494_v40, %v494_v40 }
 0x156   : > { %v929_v22 = vpop.eup %928 }
 0x157   : > { %v510_v50 = vrot.slane %v498_v44, 1  ;;  %v528_v51 = vrot.slane %v504_v46, 2  ;;  %v532_v52 = vrot.slane %v504_v46, 1  ;;  %v506_v53 = vmul.f32 %v498_v44, %v498_v44 }
 0x158   : > { %v507_v54 = vmul.f32 %v501_v45, %v501_v45  ;;  %v508_v55 = vmul.f32 %v504_v46, %v504_v46  ;;  %v515_v56 = vrot.slane %v501_v45, 2  ;;  %v520_v57 = vrot.slane %v504_v46, 3 }
 0x159   : > { %v534_v58 = vmul.f32 %v532_v52, %v501_v45  ;;  %v512_v59 = vmul.f32 %v510_v50, %v494_v40  ;;  %v524_v60 = vrot.slane %v501_v45, 1  ;;  %v530_v61 = vmul.f32 %v528_v51, %v498_v44 }
 0x15a   : > { %v517_v62 = vmul.f32 %v515_v56, %v494_v40  ;;  %v522_v63 = vmul.f32 %v520_v57, %v494_v40  ;;  %v539_v0 = vrot.slane %v506_v53, 1  ;;  %v543_v1 = vrot.slane %v507_v54, 2 }
 0x15b   : > { %v513_v2 = vmul.f32 2.0, %v512_v59  ;;  %v526_v3 = vmul.f32 %v524_v60, %v498_v44  ;;  %v531_v4 = vmul.f32 2.0, %v530_v61  ;;  %v535_v5 = vmul.f32 2.0, %v534_v58 }
 0x15c   : > { %v518_v6 = vmul.f32 2.0, %v517_v62  ;;  %v523_v7 = vmul.f32 2.0, %v522_v63  ;;  %v541_v8 = vadd.f32 %v539_v0, %v505_v49  ;;  %v547_v9 = vrot.slane %v508_v55, 3 }
 0x15d   : > { %v527_v10 = vmul.f32 2.0, %v526_v3  ;;  %v555_v11 = vrot.slane %v531_v4, 1  ;;  %v562_v12 = vsub.f32 %v505_v49, %v539_v0  ;;  %v566_v13 = vrot.slane %v513_v2, 6 }
 0x15e   : > { %v545_v14 = vsub.f32 %v541_v8, %v543_v1  ;;  %v551_v15 = vrot.slane %v523_v7, 7  ;;  %v570_v16 = vrot.slane %v518_v6, 7  ;;  %v574_v17 = vrot.slane %v535_v5, 2 }
 0x15f   : > { %v557_v18 = vadd.f32 %v555_v11, %v518_v6  ;;  %v559_v19 = vrot.slane %v527_v10, 1  ;;  %v563_v20 = vadd.f32 %v562_v12, %v543_v1  ;;  %v568_v21 = vsub.f32 %v535_v5, %v566_v13 }
 0x160   : > { %v549_v24 = vsub.f32 %v545_v14, %v547_v9  ;;  %v553_v25 = vsub.f32 %v527_v10, %v551_v15  ;;  %v572_v26 = vsub.f32 %v531_v4, %v570_v16  ;;  %v576_v27 = vadd.f32 %v574_v17, %v513_v2 }
 0x161   : > { %v561_v28 = vadd.f32 %v559_v19, %v523_v7  ;;  %v564_v29 = vsub.f32 %v563_v20, %v547_v9  ;;  %v577_v30 = vsub.f32 %v562_v12, %v543_v1  ;;  %v580_v31 = vrot.slane %v557_v18, 6 }
 0x162   : > { %v589_v33 = vrot.slane %v568_v21, 5  ;;  %v592_v34 = vrot.slane %v572_v26, 3  ;;  %v595_v35 = vrot.slane %v576_v27, 1  ;;  %v605_v36 = vsel %vm604_vm5, %v929_v22, %v549_v24 }
 0x163   : > { %v583_v38 = vrot.slane %v561_v28, 5  ;;  %v607_v39 = vsel %vm606_vm6, %v605_v36, %v553_v25  ;;  %v578_v40 = vadd.f32 %v577_v30, %v547_v9  ;;  %v586_v41 = vrot.slane %v564_v29, 4 }
 0x164   : > { %v608_v42 = vsel %vm599_vm4, %v607_v39, %v580_v31  ;;  %v614_v43 = vsel %vm613_vm7, %v589_v33, %v592_v34  ;;  %v474_v46 = vadd.f32 %v473_v37, %v1276_v48 }
 0x165   : > { %v610_v44 = vsel %vm609_vm8, %v608_v42, %v583_v38  ;;  %v616_v45 = vsel %vm615_vm9, %v614_v43, %v595_v35 }
 0x166   : > { %v612_v47 = vsel %vm611_vm10, %v610_v44, %v586_v41  ;;  %v617_v49 = vsel %vm604_vm5, %v616_v45, %v578_v40 }
 0x167   : > { %v618_v50 = vsel %vm606_vm6, %v617_v49, %v1271_v32  ;;  %620 = vst [vmem:[%s261_s11] sm:$0xff] %v612_v47 }
 0x168   : > { %v619_v48 = vsel %vm611_vm10, %v618_v50, %v474_v46 }
 0x169   : > { %621 = vst [vmem:[%s261_s11 + $0x8] sm:$0xff] %v619_v48 }
 0x16a   : > { %973 = shalt.err (!%p970_p5)
}
 0x16b   : > { %s974_s29 = scalar_lea.hbm %s1294_s13, 256  ;;  %s978_s17 = scalar_lea.hbm %s1353_s5, 512 }
 0x16c   : > { %p975_p4 = scmp.ne.s32.totalorder %s1294_s13, %s974_s29  ;;  %p979_p12 = scmp.lt.u32.totalorder %s1294_s13, %s1353_s5 }
 0x16d   : > { %p980_p1 = scmp.lt.u32.totalorder %s978_s17, %s974_s29  ;;  %p982_p8 = scmp.lt.u32.totalorder %s974_s29, %s1294_s13 }
 0x16e   : > { %p976_p7 = pnand %p975_p4, %p1361_p9 }
 0x16f   : > { %p981_p3 = por %p980_p1, %p979_p12 }
 0x170   : > { %p977_p10 = pneg %p976_p7 }
 0x171   : > { %p983_p11 = por %p982_p8, %p981_p3 }
 0x173   : > { %p984_p0 = pnand %p983_p11, %p977_p10 }
 0x175   : > { %987 = shalt.err (!%p984_p0)
}
 0x176   : > { %s1049_s11 = smov 128   ;;  %s1050_s23 = smov 8  }
 0x177   : > { %853 = dma.vmem_to_hbm [thread:$0]  (%p1361_p9), %s1296_s10, 256, %s1294_s13, %s623_s14, %s1049_s11, %s1049_s11, %s1050_s23  }
 0x178 PF: > { %s652_s12 = sand.u32 1, %s1022_s20   ;;  %p1362_p6 = scmp.ne.s32.totalorder %s1358_s9, 0 }
 0x179   : > { %p1363_p13 = scmp.ge.s32.totalorder %s1042_s25, 2  ;;  %s653_s30 = scalar_lea.sflag [#allocation5], %s652_s12 }
 0x17b   : > { %p860_p2 = pnand %p1363_p13, %p1362_p6 }
 0x17d   : > { %1017 = dma.done.wait (!%p860_p2), %s653_s30, 256  }
 0x17e   : > { %1019 = vsyncadd (!%p860_p2), %s653_s30, 4294967040  ;;  %s23_s25 = sadd.s32 1, %s1042_s25   ;;  %s1364_s20 = smov %s1026_s21 }
 0x17f   : > { %p20_p5 = scmp.ge.s32.totalorder %s23_s25, 4   ;;  %s1365_s21 = smov %s1030_s22 }
 0x180   : > { %s1366_s22 = smov %s1140_s8  ;;  %s1367_s23 = smov %s1038_s24 }
 0x181   : > { %s1368_s24 = smov %s1370_s27  ;;  %22 = sbr.rel (!%p20_p5) target bundleno = 9 (0x9), region = 85 }
 0x188   :  { %658 = vsyncpa [#allocation4], 1 }
 0x189   :  { %660 = vsyncpa [#allocation4 + $0x1], 1 }
 0x18a   :  { %661 = vsyncpa [#allocation5], 1 }
 0x18b   :  { %663 = vsyncpa [#allocation5 + $0x1], 1 }

</bundles_post_ra>
